<compile_context>
chip_gen: v7x
topology: tpu7x:2x2x1
jax: 0.10.0
libtpu: 0.0.40
codegen_flags: <defaults>
</compile_context>

<pallas_src>
import functools

import jax
import jax.numpy as jnp
from jax.experimental import pallas as pl
from jax.experimental.pallas import tpu as pltpu


def _ls_ce_kernel(x_ref, tgt_ref, out_ref, *, valid_b, tile_m, smoothing):
    confidence = 1.0 - smoothing
    tm, num_c = x_ref.shape
    tgt = tgt_ref[...]                                                  # (TM, 1) int32

    # ---- pass 1: log-sum-exp over the class (lane) axis -------------------------------
    # Read + cast per pass: stream the packed VMEM tile, don't materialize a reusable
    # f32 copy of the whole tile.
    x1 = x_ref[...].astype(jnp.float32)                                 # (TM, C)
    m = jnp.max(x1, axis=-1, keepdims=True)                             # (TM, 1)
    lse = jnp.log(jnp.sum(jnp.exp(x1 - m), axis=-1, keepdims=True)) + m  # (TM, 1)

    # ---- pass 2: fused target-logit + mean reduction -----------------------------------
    # per_row = lse - confidence*x[target] - smoothing*mean(x)
    #         = lse - sum_c (smoothing/C + confidence*[c == target]) * x_c
    col_ids = jax.lax.broadcasted_iota(jnp.int32, (1, num_c), 1)        # (1, C)
    w = jnp.float32(smoothing / num_c) + jnp.where(
        col_ids == tgt, jnp.float32(confidence), jnp.float32(0.0))      # (TM, C)
    x2 = x_ref[...].astype(jnp.float32)                                 # (TM, C)
    per_row = lse - jnp.sum(w * x2, axis=-1, keepdims=True)             # (TM, 1)

    # Ragged batch tail: mask rows past the true batch size (only emitted when needed).
    if valid_b % tile_m != 0:
        i = pl.program_id(0)
        row = jax.lax.broadcasted_iota(jnp.int32, (tm, 1), 0)
        per_row = jnp.where(i * tile_m + row < valid_b, per_row, 0.0)

    tile_sum = jnp.sum(per_row)

    # Each grid step owns one aligned (8, 128) output block: partial sum at [0, 0].
    r = jax.lax.broadcasted_iota(jnp.int32, (8, 128), 0)
    c = jax.lax.broadcasted_iota(jnp.int32, (8, 128), 1)
    out_ref[...] = jnp.where((r + c) == 0, tile_sum, jnp.float32(0.0))


def _pick_tile_m(B, C, itemsize, tile_m=None):
    if tile_m is not None:
        if tile_m >= B:
            return B                                   # single full-batch block (legal for any B)
        return max(8, (tile_m // 8) * 8)               # tiled: must be a multiple of 8

    cp = ((C + 127) // 128) * 128                      # lane-padded row width actually moved
    # Per-row VMEM footprint: double-buffered input tile (native dtype) + ~3 live f32
    # (TM, C) temporaries inside the kernel + double-buffered lane-padded int32 targets.
    bytes_per_row = 2 * cp * itemsize + 3 * cp * 4 + 2 * 128 * 4
    budget = 12 * 1024 * 1024                          # tile-related VMEM (limit set to 32 MiB)
    cand = (budget // bytes_per_row) // 8 * 8
    cand = max(8, min(8192, cand))

    # Grid shaping: >= 2 programs for non-trivial batches (both TCs on v7x, pipelining
    # everywhere), >= 4 once there is enough work; keep each step >= ~512 rows so the
    # ~0.35 us/step overhead stays amortized.
    if B >= 1024:
        target_steps = 4 if B >= 2048 else 2
        cap = -(-B // target_steps)                    # cdiv
        cap = max(512, ((cap + 7) // 8) * 8)
        cand = min(cand, cap)

    if cand >= B:
        return B
    return cand


def label_smoothing_cross_entropy(x, target, smoothing=0.1, tile_m=None):
    """x: (B, C) logits (any float dtype), target: (B,) int labels. Returns scalar mean loss."""
    B, C = x.shape
    itemsize = jnp.dtype(x.dtype).itemsize
    tm = _pick_tile_m(B, C, itemsize, tile_m)
    num_tiles = pl.cdiv(B, tm)

    tgt2d = target.astype(jnp.int32).reshape(B, 1)

    kernel = functools.partial(
        _ls_ce_kernel, valid_b=B, tile_m=tm, smoothing=float(smoothing)
    )

    cost = pl.CostEstimate(
        flops=6 * B * C,
        transcendentals=B * C + 2 * B,
        bytes_accessed=B * C * itemsize + B * 4 + num_tiles * 8 * 128 * 4,
    )

    partials = pl.pallas_call(
        kernel,
        out_shape=jax.ShapeDtypeStruct((num_tiles * 8, 128), jnp.float32),
        grid=(num_tiles,),
        in_specs=[
            pl.BlockSpec((tm, C), lambda i: (i, 0)),   # class axis = full array dim
            pl.BlockSpec((tm, 1), lambda i: (i, 0)),
        ],
        out_specs=pl.BlockSpec((8, 128), lambda i: (i, 0)),
        compiler_params=pltpu.CompilerParams(
            dimension_semantics=("parallel",),
            vmem_limit_bytes=32 * 1024 * 1024,
        ),
        cost_estimate=cost,
    )(x, tgt2d)

    # Each tile contributed one nonzero entry; trivial XLA reduce + mean.
    return jnp.sum(partials) / jnp.float32(B)


def _reference(x, target, smoothing=0.1):
    confidence = 1.0 - smoothing
    logprobs = jax.nn.log_softmax(x.astype(jnp.float32), axis=-1)
    nll = -jnp.take_along_axis(logprobs, target[:, None], axis=-1)[:, 0]
    smooth = -jnp.mean(logprobs, axis=-1)
    return jnp.mean(confidence * nll + smoothing * smooth)


if __name__ == "__main__":
    key = jax.random.PRNGKey(0)
    k1, k2, k3, k4, k5, k6 = jax.random.split(key, 6)

    # Case 1: small, deliberately non-aligned shapes, single full-batch block.
    B, C = 6, 10
    x = jax.random.normal(k1, (B, C), dtype=jnp.float32)
    tgt = jax.random.randint(k2, (B,), 0, C, dtype=jnp.int32)
    loss = jax.block_until_ready(label_smoothing_cross_entropy(x, tgt, smoothing=0.1))
    ref = _reference(x, tgt, smoothing=0.1)
    assert jnp.allclose(loss, ref, atol=1e-5, rtol=1e-5), (loss, ref)

    # Case 2: forced multi-tile batch path with a ragged tail, native bf16 logits.
    B2, C2 = 37, 226
    x2 = jax.random.normal(k3, (B2, C2), dtype=jnp.float32).astype(jnp.bfloat16)
    tgt2 = jax.random.randint(k4, (B2,), 0, C2, dtype=jnp.int32)
    loss2 = jax.block_until_ready(
        label_smoothing_cross_entropy(x2, tgt2, smoothing=0.1, tile_m=16)
    )
    ref2 = _reference(x2.astype(jnp.float32), tgt2, smoothing=0.1)
    assert jnp.allclose(loss2, ref2, atol=1e-4, rtol=1e-4), (loss2, ref2)

    # Case 3: moderate batch exercising the auto tile picker / multi-program grid shaping.
    B3, C3 = 1040, 226
    x3 = jax.random.normal(k5, (B3, C3), dtype=jnp.float32).astype(jnp.bfloat16)
    tgt3 = jax.random.randint(k6, (B3,), 0, C3, dtype=jnp.int32)
    loss3 = jax.block_until_ready(label_smoothing_cross_entropy(x3, tgt3, smoothing=0.1))
    ref3 = _reference(x3.astype(jnp.float32), tgt3, smoothing=0.1)
    assert jnp.allclose(loss3, ref3, atol=1e-4, rtol=1e-4), (loss3, ref3)

    print("KERNEL_OK")
</pallas_src>

<mosaic_0001>
module attributes {stable_mosaic.version = 11 : i64} {
  func.func @_ls_ce_kernel(%arg0: i32, %arg1: memref<6x10xf32, #tpu.memory_space<vmem>>, %arg2: memref<6x1xi32, #tpu.memory_space<vmem>>, %arg3: memref<8x128xf32, #tpu.memory_space<vmem>>) attributes {dimension_semantics = [#tpu.dimension_semantics<parallel>], iteration_bounds = array<i64: 1>, scalar_prefetch = 0 : i64, scratch_operands = 0 : i64, tpu.core_type = #tpu.core_type<tc>, window_params = [{transform_indices = @transform_0, window_bounds = array<i64: 6, 10>}, {transform_indices = @transform_1, window_bounds = array<i64: 6, 1>}, {transform_indices = @transform_2, window_bounds = array<i64: 8, 128>}]} {
    %c0 = arith.constant 0 : index
    %c0_0 = arith.constant 0 : index
    %0 = vector.load %arg2[%c0, %c0_0] : memref<6x1xi32, #tpu.memory_space<vmem>>, vector<6x1xi32>
    %c0_1 = arith.constant 0 : index
    %c0_2 = arith.constant 0 : index
    %1 = vector.load %arg1[%c0_1, %c0_2] : memref<6x10xf32, #tpu.memory_space<vmem>>, vector<6x10xf32>
    %cst = arith.constant dense<0xFF800000> : vector<6xf32>
    %2 = vector.multi_reduction <maximumf>, %1, %cst [1] : vector<6x10xf32> to vector<6xf32>
    %3 = vector.shape_cast %2 : vector<6xf32> to vector<6x1xf32>
    %4 = vector.broadcast %3 : vector<6x1xf32> to vector<6x10xf32>
    %5 = arith.subf %1, %4 : vector<6x10xf32>
    %6 = math.exp %5 : vector<6x10xf32>
    %cst_3 = arith.constant dense<0.000000e+00> : vector<6xf32>
    %7 = vector.multi_reduction <add>, %6, %cst_3 [1] : vector<6x10xf32> to vector<6xf32>
    %8 = vector.shape_cast %7 : vector<6xf32> to vector<6x1xf32>
    %9 = math.log %8 : vector<6x1xf32>
    %10 = arith.addf %9, %3 : vector<6x1xf32>
    %11 = tpu.iota {dimensions = array<i32: 1>} : vector<1x10xi32>
    %12 = vector.broadcast %11 : vector<1x10xi32> to vector<6x10xi32>
    %13 = vector.broadcast %0 : vector<6x1xi32> to vector<6x10xi32>
    %14 = arith.cmpi eq, %12, %13 : vector<6x10xi32>
    %cst_4 = arith.constant 0.899999976 : f32
    %cst_5 = arith.constant 0.000000e+00 : f32
    %15 = vector.broadcast %cst_4 : f32 to vector<6x10xf32>
    %16 = vector.broadcast %cst_5 : f32 to vector<6x10xf32>
    %17 = arith.select %14, %15, %16 : vector<6x10xi1>, vector<6x10xf32>
    %cst_6 = arith.constant 0.00999999977 : f32
    %18 = vector.broadcast %cst_6 : f32 to vector<6x10xf32>
    %19 = arith.addf %18, %17 : vector<6x10xf32>
    %c0_7 = arith.constant 0 : index
    %c0_8 = arith.constant 0 : index
    %20 = vector.load %arg1[%c0_7, %c0_8] : memref<6x10xf32, #tpu.memory_space<vmem>>, vector<6x10xf32>
    %21 = arith.mulf %19, %20 : vector<6x10xf32>
    %cst_9 = arith.constant dense<0.000000e+00> : vector<6xf32>
    %22 = vector.multi_reduction <add>, %21, %cst_9 [1] : vector<6x10xf32> to vector<6xf32>
    %23 = vector.shape_cast %22 : vector<6xf32> to vector<6x1xf32>
    %24 = arith.subf %10, %23 : vector<6x1xf32>
    %25 = vector.shape_cast %24 : vector<6x1xf32> to vector<1x6x1xf32>
    %cst_10 = arith.constant dense<0.000000e+00> : vector<1xf32>
    %26 = vector.multi_reduction <add>, %25, %cst_10 [1, 2] : vector<1x6x1xf32> to vector<1xf32>
    %27 = vector.shape_cast %26 : vector<1xf32> to vector<1x1x1xf32>
    %28 = vector.extract %27[0, 0, 0] : f32 from vector<1x1x1xf32>
    %29 = tpu.iota {dimensions = array<i32: 0>} : vector<8x128xi32>
    %30 = tpu.iota {dimensions = array<i32: 1>} : vector<8x128xi32>
    %31 = arith.addi %29, %30 : vector<8x128xi32>
    %c0_i32 = arith.constant 0 : i32
    %32 = vector.broadcast %c0_i32 : i32 to vector<8x128xi32>
    %33 = arith.cmpi eq, %31, %32 : vector<8x128xi32>
    %cst_11 = arith.constant 0.000000e+00 : f32
    %34 = vector.broadcast %28 : f32 to vector<8x128xf32>
    %35 = vector.broadcast %cst_11 : f32 to vector<8x128xf32>
    %36 = arith.select %33, %34, %35 : vector<8x128xi1>, vector<8x128xf32>
    %c0_12 = arith.constant 0 : index
    %c0_13 = arith.constant 0 : index
    %37 = vector.load %arg3[%c0_12, %c0_13] : memref<8x128xf32, #tpu.memory_space<vmem>>, vector<8x128xf32>
    tpu.vector_store %arg3[%c0_12, %c0_13], %36 {strides = array<i32>} : memref<8x128xf32, #tpu.memory_space<vmem>>, vector<8x128xf32>,
    return
  }
  func.func @transform_0(%arg0: i32) -> (i32, i32) {
    %c0_i32 = arith.constant 0 : i32
    %c0_i32_0 = arith.constant 0 : i32
    return %arg0, %c0_i32 : i32, i32
  }
  func.func @transform_1(%arg0: i32) -> (i32, i32) {
    %c0_i32 = arith.constant 0 : i32
    %c0_i32_0 = arith.constant 0 : i32
    return %arg0, %c0_i32 : i32, i32
  }
  func.func @transform_2(%arg0: i32) -> (i32, i32) {
    %c0_i32 = arith.constant 0 : i32
    %c0_i32_0 = arith.constant 0 : i32
    return %arg0, %c0_i32 : i32, i32
  }
}

</mosaic_0001>

<bundles_post_ra>
// kernel: tpu_custom_call.1
= control target key start
LH: loop header
LB: loop body
LE: loop exit
PB: predicated region body
PF: predicated region fallthrough
CT: control target
= control target key end

     0   :  { %vm14_vm0 = vcmask 78848   ;;  %v106_v2 = vmov 0   ;;  %s145_s0 = inlined_call_operand.vmem [shape: f32[6,10], index: 0, kind: input, shape index: {}]   ;;  %s146_s1 = inlined_call_operand.vmem [shape: s32[6,1], index: 1, kind: input, shape index: {}]   ;;  %s147_s2 = inlined_call_operand.hbm [shape: f32[8,128], index: 2, kind: output, shape index: {}]  }
   0x1   :  { %v13_v0 = vld [vmem:[%s145_s0] sm:$0x3f]  ;;  %77 = vset.pattern.permute.xlu0 %v106_v2 }
   0x2   :  { %v15_v1 = vsel %vm14_vm0, %v13_v0, -inf }
   0x3   :  { %7 = vsyncpa [#allocation3], 0  ;;  %16 = vmax.xlane.f32.xlu0 %v15_v1  ;;  %v12_v3 = vld [vmem:[%s146_s1] sm:$0x3f]  ;;  %v27_v6 = vlaneseq  ;;  %v107_v10 = vmov 0.0   ;;  %vm40_vm2 = vcmask 5120  }
   0x4   :  { %s108_s0 = smov [#allocation2]  }
   0x5   :  { %v28_v8 = vand.u32 127, %v27_v6  ;;  %v52_v31 = vshrl.u32 %v27_v6, 7  ;;  %s64_s1 = sshll.u32 %s108_s0, 4  ;;  %s65_s1 = int_to_ptr.vmem [resolvable:$true] %s64_s1 }
   0x6   :  { %s82_s14 = scalar_lea.vmem %s65_s1, 128  ;;  %p87_p1 = scmp.lt.s32.totalorder %s65_s1, %s65_s1 }
   0x7   :  { %v53_v32 = vadd.s32 %v52_v31, %v28_v8  ;;  %p83_p0 = scmp.ne.s32.totalorder %s65_s1, %s82_s14  ;;  %p88_p2 = scmp.lt.s32.totalorder %s82_s14, %s82_s14 }
   0x9   :  { %vm54_vm3 = vcmp.eq.s32.totalorder %v53_v32, 0  ;;  %p89_p3 = por %p88_p2, %p87_p1 }
   0xb   :  { %p90_p4 = pnand %p89_p3, %p83_p0 }
  0x19   :  { %30 = vperm.xlu0 %77, %v12_v3  }
  0x90   :  { %v17_v4 = vpop.xlane.xlu0 %16 }
  0x91   :  { %v18_v5 = vsub.f32 %v13_v0, %v17_v4 }
  0x93   :  { %v19_v7 = vmul.f32 1.442695, %v18_v5 }
  0x95   :  { %78 = vpow2.f32 %v19_v7 }
  0x98   :  { %v31_v9 = vpop.permute.xlu0 %30 }
  0x99   :  { %vm32_vm1 = vcmp.eq.s32.totalorder %v28_v8, %v31_v9 }
  0x9a   :  { %v33_v11 = vsel %vm32_vm1, 0.9, %v107_v10 }
  0x9b   :  { %v34_v12 = vadd.f32 0.01, %v33_v11 }
  0x9d   :  { %v35_v13 = vmul.f32 %v34_v12, %v13_v0 }
  0x9f   :  { %v79_v14 = vpop.eup %78  ;;  %v36_v16 = vsel %vm14_vm0, %v35_v13, 0.0 }
  0xa0   :  { %v21_v15 = vsel %vm14_vm0, %v79_v14, 0.0 }
  0xa1   :  { %22 = vadd.xlane.f32.xlu1 %v21_v15 }
  0xa5   :  { %37 = vadd.xlane.f32.xlu1 %v36_v16 }
 0x12e   :  { %v23_v17 = vpop.xlane.xlu1 %22 }
 0x12f   :  { %80 = vlog2.f32 %v23_v17 }
 0x132   :  { %v38_v20 = vpop.xlane.xlu1 %37 }
 0x139   :  { %v81_v18 = vpop.eup %80 }
 0x13a   :  { %v25_v19 = vmul.f32 0.6931472, %v81_v18 }
 0x13c   :  { %v26_v21 = vadd.f32 %v25_v19, %v17_v4 }
 0x13e   :  { %v39_v22 = vsub.f32 %v26_v21, %v38_v20 }
 0x140   :  { %v41_v23 = vsel %vm40_vm2, %v39_v22, 0.0 }
 0x141   :  { %42 = vadd.xlane.f32.xlu1 %v41_v23 }
 0x1ce   :  { %v43_v24 = vpop.xlane.xlu1 %42 }
 0x1cf   :  { %v44_v25 = vrot.slane %v43_v24, 4 }
 0x1d1   :  { %v45_v26 = vadd.f32 %v44_v25, %v43_v24 }
 0x1d3   :  { %v46_v27 = vrot.slane %v45_v26, 2 }
 0x1d5   :  { %v47_v28 = vadd.f32 %v46_v27, %v45_v26 }
 0x1d7   :  { %v48_v29 = vrot.slane %v47_v28, 1 }
 0x1d9   :  { %v49_v30 = vadd.f32 %v48_v29, %v47_v28 }
 0x1db   :  { %72 = vpush %v49_v30 }
 0x20c   :  { %s73_s13 = spop %72 }
 0x20d   :  { %v55_v33 = vstv %s73_s13 }
 0x20e   :  { %v56_v34 = vsel %vm54_vm3, %v55_v33, 0.0 }
 0x20f   :  { %57 = vst [vmem:[#allocation2] sm:$0xff] %v56_v34 }
 0x210   :  { %93 = shalt.err (!%p90_p4)
}
 0x211   :  { %s94_s17 = scalar_lea.hbm %s147_s2, 128 }
 0x212   :  { %p95_p5 = scmp.ne.s32.totalorder %s147_s2, %s94_s17  ;;  %p98_p6 = scmp.lt.u32.totalorder %s94_s17, %s147_s2 }
 0x214   :  { %p100_p7 = pnand %p98_p6, %p95_p5 }
 0x216   :  { %103 = shalt.err (!%p100_p7)
}
 0x217   :  { %67 = dma.vmem_to_hbm [thread:$0]  %s65_s1, 128, %s147_s2, [#allocation3]  }
 0x218   :  { %104 = dma.done.wait [#allocation3], 128  }
 0x219   :  { %105 = vsyncadd [#allocation3], 4294967168 }
 0x21a   :  { %71 = vsyncpa [#allocation3], 1 }

</bundles_post_ra>
